<compile_context>
chip_gen: v6e
topology: v6e:2x2x1
jax: 0.10.0
libtpu: 0.0.40
codegen_flags: <defaults>
</compile_context>

<pallas_src>
import functools

import jax
import jax.numpy as jnp
from jax.experimental import pallas as pl
from jax.experimental.pallas import tpu as pltpu


def _iln_kernel(x_ref, p_ref, o_ref, *, eps):
    # x_ref: (C, HW) lane-dense tile for one batch element.
    # p_ref: (C, 3) packed [rho, gamma, beta].
    C, HW = x_ref.shape
    n_in = HW
    n_ln = C * HW

    x = x_ref[...].astype(jnp.float32)

    # ---- Instance (per-channel) stats over the spatial (lane) axis. ----
    in_mean = jnp.sum(x, axis=1, keepdims=True) * (1.0 / n_in)          # (C, 1)
    xc = x - in_mean                                                    # centered once, reused
    ssq_c = jnp.sum(xc * xc, axis=1, keepdims=True)                     # (C, 1) centered SSQ
    in_var = ssq_c * (1.0 / (n_in - 1))                                 # unbiased

    # ---- Layer-norm stats derived from per-channel partials (no extra
    #      full-tile reductions): ln_mean = mean of channel means,
    #      ln_SSQ = sum_c [ssq_c + n_in * (in_mean_c - ln_mean)^2]. ----
    ln_mean = jnp.sum(in_mean) * (1.0 / C)                              # scalar
    delta = in_mean - ln_mean                                           # (C, 1)
    ln_ssq = jnp.sum(ssq_c) + n_in * jnp.sum(delta * delta)             # scalar
    ln_var = ln_ssq * (1.0 / (n_ln - 1))                                # unbiased

    r_in = jax.lax.rsqrt(in_var + eps)                                  # (C, 1)
    r_ln = jax.lax.rsqrt(ln_var + eps)                                  # scalar

    rho = p_ref[:, 0:1].astype(jnp.float32)                             # (C, 1)
    gamma = p_ref[:, 1:2].astype(jnp.float32)
    beta = p_ref[:, 2:3].astype(jnp.float32)

    # Fold the IN/LN blend and affine into one per-channel scale + bias:
    #   out = rho*(xc*r_in) + (1-rho)*((xc+delta)*r_ln)
    #       = xc*(rho*r_in + (1-rho)*r_ln) + (1-rho)*r_ln*delta
    #   out*gamma + beta = xc*scale + bias
    one_m_rho_rln = (1.0 - rho) * r_ln                                  # (C, 1)
    scale = gamma * (rho * r_in + one_m_rho_rln)                        # (C, 1)
    bias = gamma * one_m_rho_rln * delta + beta                         # (C, 1)

    o_ref[...] = (xc * scale + bias).astype(o_ref.dtype)


def iln_forward(x, rho, gamma, beta, eps=1e-5):
    """x: (N, C, H, W);  rho/gamma/beta: (1, C, 1, 1) as in the PyTorch module."""
    N, C, H, W = x.shape
    HW = H * W

    # Lane-dense view: spatial dim on the lane axis, no in-kernel reshape.
    x2 = x.reshape(N, C, HW)
    params = jnp.stack(
        [rho.reshape(C), gamma.reshape(C), beta.reshape(C)], axis=1
    ).astype(jnp.float32)                                               # (C, 3)

    itemsize = jnp.dtype(x.dtype).itemsize
    block_bytes = C * HW * itemsize
    # Pipeline holds ~2 input + 2 output buffers per step, plus params + slack.
    # TODO(synk): for very large per-sample tiles (> ~12 MiB, esp. v7x 64 MiB
    # VMEM) add an inner "arbitrary" spatial grid axis with a stats/normalize
    # two-phase pass instead of one-sample-per-step.
    vmem_need = 4 * block_bytes + 2 * (C * 3 * 4) + (1 << 20)
    vmem_limit = int(min(max(vmem_need, 16 << 20), 100 << 20))

    cost = pl.CostEstimate(
        flops=10 * N * C * HW,
        transcendentals=N * (C + 1),
        bytes_accessed=2 * N * C * HW * itemsize + C * 3 * 4,
    )

    kernel = functools.partial(_iln_kernel, eps=eps)
    out = pl.pallas_call(
        kernel,
        out_shape=jax.ShapeDtypeStruct((N, C, HW), x.dtype),
        grid_spec=pltpu.PrefetchScalarGridSpec(
            num_scalar_prefetch=0,
            grid=(N,),
            in_specs=[
                pl.BlockSpec((None, C, HW), lambda b: (b, 0, 0)),  # batch dim squeezed
                pl.BlockSpec((C, 3), lambda b: (0, 0)),            # packed rho/gamma/beta
            ],
            out_specs=pl.BlockSpec((None, C, HW), lambda b: (b, 0, 0)),
        ),
        compiler_params=pltpu.CompilerParams(
            dimension_semantics=("parallel",),
            vmem_limit_bytes=vmem_limit,
        ),
        cost_estimate=cost,
    )(x2, params)
    return out.reshape(N, C, H, W)


def _iln_reference(x, rho, gamma, beta, eps=1e-5):
    """Pure-JAX reference mirroring the PyTorch forward (unbiased variance)."""
    x = x.astype(jnp.float32)
    in_mean = jnp.mean(x, axis=(2, 3), keepdims=True)
    n_in = x.shape[2] * x.shape[3]
    in_var = jnp.sum((x - in_mean) ** 2, axis=(2, 3), keepdims=True) / (n_in - 1)
    out_in = (x - in_mean) / jnp.sqrt(in_var + eps)

    ln_mean = jnp.mean(x, axis=(1, 2, 3), keepdims=True)
    n_ln = x.shape[1] * x.shape[2] * x.shape[3]
    ln_var = jnp.sum((x - ln_mean) ** 2, axis=(1, 2, 3), keepdims=True) / (n_ln - 1)
    out_ln = (x - ln_mean) / jnp.sqrt(ln_var + eps)

    out = rho * out_in + (1 - rho) * out_ln
    return out * gamma + beta


if __name__ == "__main__":
    N, C, H, W = 2, 4, 16, 16
    key = jax.random.PRNGKey(0)
    kx, kr, kg, kb = jax.random.split(key, 4)
    x = jax.random.normal(kx, (N, C, H, W), dtype=jnp.float32)

    # Module init values (rho=0, gamma=1, beta=0) are a degenerate test for the
    # blend, so use random params to exercise every term; shape (1, C, 1, 1).
    rho = jax.random.uniform(kr, (1, C, 1, 1), dtype=jnp.float32)
    gamma = 1.0 + 0.1 * jax.random.normal(kg, (1, C, 1, 1), dtype=jnp.float32)
    beta = 0.1 * jax.random.normal(kb, (1, C, 1, 1), dtype=jnp.float32)

    out = iln_forward(x, rho, gamma, beta)
    out = jax.block_until_ready(out)

    ref = _iln_reference(x, rho, gamma, beta)
    assert out.shape == (N, C, H, W)
    assert jnp.allclose(out, ref, atol=1e-5, rtol=1e-5), "mismatch vs reference"

    # Also check the default-init parameter case.
    out0 = jax.block_until_ready(
        iln_forward(x, jnp.zeros((1, C, 1, 1)), jnp.ones((1, C, 1, 1)), jnp.zeros((1, C, 1, 1)))
    )
    ref0 = _iln_reference(x, jnp.zeros((1, C, 1, 1)), jnp.ones((1, C, 1, 1)), jnp.zeros((1, C, 1, 1)))
    assert jnp.allclose(out0, ref0, atol=1e-5, rtol=1e-5), "mismatch vs reference (default params)"

    print("KERNEL_OK")
</pallas_src>

<mosaic_0001>
module attributes {stable_mosaic.version = 11 : i64} {
  func.func @_iln_kernel(%arg0: i32, %arg1: memref<1x4x256xf32, #tpu.memory_space<vmem>>, %arg2: memref<4x3xf32, #tpu.memory_space<vmem>>, %arg3: memref<1x4x256xf32, #tpu.memory_space<vmem>>) attributes {dimension_semantics = [#tpu.dimension_semantics<parallel>], iteration_bounds = array<i64: 2>, scalar_prefetch = 0 : i64, scratch_operands = 0 : i64, tpu.core_type = #tpu.core_type<tc>, window_params = [{transform_indices = @transform_0, window_bounds = array<i64: 1, 4, 256>}, {pipeline_mode = #tpu.pipeline_mode<synchronous>, transform_indices = @transform_1, window_bounds = array<i64: 4, 3>}, {transform_indices = @transform_2, window_bounds = array<i64: 1, 4, 256>}]} {
    %c0 = arith.constant 0 : index
    %c0_0 = arith.constant 0 : index
    %c0_1 = arith.constant 0 : index
    %0 = vector.load %arg1[%c0, %c0_0, %c0_1] : memref<1x4x256xf32, #tpu.memory_space<vmem>>, vector<1x4x256xf32>
    %1 = vector.shape_cast %0 : vector<1x4x256xf32> to vector<4x256xf32>
    %cst = arith.constant dense<0.000000e+00> : vector<4xf32>
    %2 = vector.multi_reduction <add>, %1, %cst [1] : vector<4x256xf32> to vector<4xf32>
    %3 = vector.shape_cast %2 : vector<4xf32> to vector<4x1xf32>
    %cst_2 = arith.constant 3.906250e-03 : f32
    %4 = vector.broadcast %cst_2 : f32 to vector<4x1xf32>
    %5 = arith.mulf %3, %4 : vector<4x1xf32>
    %6 = vector.broadcast %5 : vector<4x1xf32> to vector<4x256xf32>
    %7 = arith.subf %1, %6 : vector<4x256xf32>
    %8 = arith.mulf %7, %7 : vector<4x256xf32>
    %cst_3 = arith.constant dense<0.000000e+00> : vector<4xf32>
    %9 = vector.multi_reduction <add>, %8, %cst_3 [1] : vector<4x256xf32> to vector<4xf32>
    %10 = vector.shape_cast %9 : vector<4xf32> to vector<4x1xf32>
    %cst_4 = arith.constant 0.00392156886 : f32
    %11 = vector.broadcast %cst_4 : f32 to vector<4x1xf32>
    %12 = arith.mulf %10, %11 : vector<4x1xf32>
    %13 = vector.shape_cast %5 : vector<4x1xf32> to vector<1x4x1xf32>
    %cst_5 = arith.constant dense<0.000000e+00> : vector<1xf32>
    %14 = vector.multi_reduction <add>, %13, %cst_5 [1, 2] : vector<1x4x1xf32> to vector<1xf32>
    %15 = vector.shape_cast %14 : vector<1xf32> to vector<1x1x1xf32>
    %16 = vector.extract %15[0, 0, 0] : f32 from vector<1x1x1xf32>
    %cst_6 = arith.constant 2.500000e-01 : f32
    %17 = arith.mulf %16, %cst_6 : f32
    %18 = vector.broadcast %17 : f32 to vector<4x1xf32>
    %19 = arith.subf %5, %18 : vector<4x1xf32>
    %20 = vector.shape_cast %10 : vector<4x1xf32> to vector<1x4x1xf32>
    %cst_7 = arith.constant dense<0.000000e+00> : vector<1xf32>
    %21 = vector.multi_reduction <add>, %20, %cst_7 [1, 2] : vector<1x4x1xf32> to vector<1xf32>
    %22 = vector.shape_cast %21 : vector<1xf32> to vector<1x1x1xf32>
    %23 = vector.extract %22[0, 0, 0] : f32 from vector<1x1x1xf32>
    %24 = arith.mulf %19, %19 : vector<4x1xf32>
    %25 = vector.shape_cast %24 : vector<4x1xf32> to vector<1x4x1xf32>
    %cst_8 = arith.constant dense<0.000000e+00> : vector<1xf32>
    %26 = vector.multi_reduction <add>, %25, %cst_8 [1, 2] : vector<1x4x1xf32> to vector<1xf32>
    %27 = vector.shape_cast %26 : vector<1xf32> to vector<1x1x1xf32>
    %28 = vector.extract %27[0, 0, 0] : f32 from vector<1x1x1xf32>
    %cst_9 = arith.constant 2.560000e+02 : f32
    %29 = arith.mulf %cst_9, %28 : f32
    %30 = arith.addf %23, %29 : f32
    %cst_10 = arith.constant 9.77517105E-4 : f32
    %31 = arith.mulf %30, %cst_10 : f32
    %cst_11 = arith.constant 9.99999974E-6 : f32
    %32 = vector.broadcast %cst_11 : f32 to vector<4x1xf32>
    %33 = arith.addf %12, %32 : vector<4x1xf32>
    %34 = math.rsqrt %33 : vector<4x1xf32>
    %cst_12 = arith.constant 9.99999974E-6 : f32
    %35 = arith.addf %31, %cst_12 : f32
    %36 = math.rsqrt %35 : f32
    %c0_13 = arith.constant 0 : index
    %c0_14 = arith.constant 0 : index
    %37 = vector.load %arg2[%c0_13, %c0_14] : memref<4x3xf32, #tpu.memory_space<vmem>>, vector<4x1xf32>
    %c0_15 = arith.constant 0 : index
    %c1 = arith.constant 1 : index
    %38 = vector.load %arg2[%c0_15, %c1] : memref<4x3xf32, #tpu.memory_space<vmem>>, vector<4x1xf32>
    %c0_16 = arith.constant 0 : index
    %c2 = arith.constant 2 : index
    %39 = vector.load %arg2[%c0_16, %c2] : memref<4x3xf32, #tpu.memory_space<vmem>>, vector<4x1xf32>
    %cst_17 = arith.constant 1.000000e+00 : f32
    %40 = vector.broadcast %cst_17 : f32 to vector<4x1xf32>
    %41 = arith.subf %40, %37 : vector<4x1xf32>
    %42 = vector.broadcast %36 : f32 to vector<4x1xf32>
    %43 = arith.mulf %41, %42 : vector<4x1xf32>
    %44 = arith.mulf %37, %34 : vector<4x1xf32>
    %45 = arith.addf %44, %43 : vector<4x1xf32>
    %46 = arith.mulf %38, %45 : vector<4x1xf32>
    %47 = arith.mulf %38, %43 : vector<4x1xf32>
    %48 = arith.mulf %47, %19 : vector<4x1xf32>
    %49 = arith.addf %48, %39 : vector<4x1xf32>
    %50 = vector.broadcast %46 : vector<4x1xf32> to vector<4x256xf32>
    %51 = arith.mulf %7, %50 : vector<4x256xf32>
    %52 = vector.broadcast %49 : vector<4x1xf32> to vector<4x256xf32>
    %53 = arith.addf %51, %52 : vector<4x256xf32>
    %c0_18 = arith.constant 0 : index
    %c0_19 = arith.constant 0 : index
    %c0_20 = arith.constant 0 : index
    %54 = vector.load %arg3[%c0_18, %c0_19, %c0_20] : memref<1x4x256xf32, #tpu.memory_space<vmem>>, vector<1x4x256xf32>
    %55 = vector.shape_cast %54 : vector<1x4x256xf32> to vector<4x256xf32>
    %56 = vector.shape_cast %53 : vector<4x256xf32> to vector<1x4x256xf32>
    tpu.vector_store %arg3[%c0_18, %c0_19, %c0_20], %56 {strides = array<i32>} : memref<1x4x256xf32, #tpu.memory_space<vmem>>, vector<1x4x256xf32>,
    return
  }
  func.func @transform_0(%arg0: i32) -> (i32, i32, i32) {
    %c0_i32 = arith.constant 0 : i32
    %c0_i32_0 = arith.constant 0 : i32
    %c0_i32_1 = arith.constant 0 : i32
    return %arg0, %c0_i32, %c0_i32_0 : i32, i32, i32
  }
  func.func @transform_1(%arg0: i32) -> (i32, i32) {
    %c0_i32 = arith.constant 0 : i32
    %c0_i32_0 = arith.constant 0 : i32
    %c0_i32_1 = arith.constant 0 : i32
    return %c0_i32, %c0_i32_0 : i32, i32
  }
  func.func @transform_2(%arg0: i32) -> (i32, i32, i32) {
    %c0_i32 = arith.constant 0 : i32
    %c0_i32_0 = arith.constant 0 : i32
    %c0_i32_1 = arith.constant 0 : i32
    return %arg0, %c0_i32, %c0_i32_0 : i32, i32, i32
  }
}

</mosaic_0001>

<bundles_post_ra>
// kernel: tpu_custom_call.1
= control target key start
LH: loop header
LB: loop body
LE: loop exit
PB: predicated region body
PF: predicated region fallthrough
CT: control target
= control target key end

     0   :  { %7 = vsyncpa [#allocation3], 0  ;;  %s819_s0 = inlined_call_operand.hbm [shape: f32[2,4,256], index: 0, kind: input, shape index: {}]   ;;  %s820_s1 = inlined_call_operand.hbm [shape: f32[4,3], index: 1, kind: input, shape index: {}]   ;;  %s821_s2 = inlined_call_operand.hbm [shape: f32[2,4,256], index: 2, kind: output, shape index: {}]  }
   0x1   :  { %9 = vsyncpa [#allocation3 + $0x1], 0 }
   0x2   :  { %10 = vsyncpa [#allocation6], 0 }
   0x3   :  { %11 = vsyncpa [#allocation4], 0 }
   0x4   :  { %13 = vsyncpa [#allocation4 + $0x1], 0  ;;  %s632_s9 = smov 0   ;;  %s634_s10 = smov 0  }
   0x5   :  { %s636_s11 = smov 0   ;;  %s638_s12 = smov 0  }
   0x6 LB: > { %s653_s13 = sadd.s32 4294967295, %s608_s12   ;;  %s392_s14 = sadd.s32 4294967294, %s608_s12   ;;  %s608_s12 = sphi %s638_s12, %s844_s12   ;;  %s604_s11 = sphi %s636_s11, %s843_s11   ;;  %s600_s10 = sphi %s634_s10, %s842_s10   ;;  %s596_s9 = sphi %s632_s9, %s841_s9  }
   0x7   : > { %p39_p0 = scmp.ne.s32.totalorder %s600_s10, %s596_s9  ;;  %p822_p1 = scmp.eq.s32.totalorder %s653_s13, 0 }
   0x8   : > { %p90_p3 = scmp.eq.s32.totalorder %s392_s14, 1  ;;  %p393_p5 = scmp.ge.s32.totalorder %s608_s12, 1 }
   0x9   : > { %p662_p4 = por %p822_p1, %p39_p0  ;;  %p97_p7 = scmp.lt.s32.totalorder %s608_s12, 3 }
   0xa   : > { %p667_p6 = por %p90_p3, %p39_p0  ;;  %s610_s18 = smov [#allocation5]  }
   0xb   : > { %s826_s15 = scalar_select %p662_p4, 1, 0 }
   0xc   : > { %s827_s16 = scalar_select %p667_p6, 1, 0 }
   0xd   : > { %p672_p8 = pnand %p393_p5, %p97_p7  ;;  %s110_s19 = sshll.u32 %s610_s18, 4  ;;  %s111_s19 = int_to_ptr.vmem [resolvable:$true] %s110_s19 }
   0xe   : > { %s680_s20 = sadd.s32 1, %s608_s12   ;;  %s26_s24 = sadd.s32 1, %s604_s11 }
   0xf   : > { %s828_s17 = scalar_select %p672_p8, 1, 0 }
  0x10   : > { %p426_p10 = pneg %p672_p8  ;;  %s23_s22 = ssub.s32 %s608_s12, %s680_s20 }
  0x11   : > { %p690_p12 = scmp.eq.s32.totalorder %s23_s22, 0  ;;  %p33_p13 = scmp.ne.s32.totalorder %s604_s11, %s600_s10 }
  0x12   : > { %p684_p11 = pnand %p426_p10, %p822_p1  ;;  %s497_s25 = scalar_lea.vmem %s111_s19, 64 }
  0x13   : > { %p498_p3 = scmp.ne.s32.totalorder %s111_s19, %s497_s25  ;;  %p505_p9 = scmp.lt.s32.totalorder %s111_s19, %s111_s19 }
  0x14   : > { %p488_p0 = pneg %p684_p11  ;;  %p506_p2 = scmp.lt.s32.totalorder %s497_s25, %s497_s25 }
  0x16   : > { %p500_p5 = pnand %p498_p3, %p488_p0  ;;  %p507_p10 = por %p506_p2, %p505_p9 }
  0x18   : > { %p501_p7 = pneg %p500_p5 }
  0x1a   : > { %p508_p1 = pnand %p507_p10, %p501_p7 }
  0x1c   : > { %511 = shalt.err (!%p508_p1)
}
  0x1d   : > { %429 = dma.hbm_to_vmem [thread:$0]  (!%p684_p11), %s820_s1, 64, %s111_s19, [#allocation6]  }
  0x1e   : > { %s707_s28 = scalar_select %p690_p12, %s604_s11, %s26_s24  }
  0x1f   : > { %p34_p1 = scmp.eq.s32.totalorder %s608_s12, 0  ;;  %p831_p2 = scmp.eq.s32.totalorder %s653_s13, 1 }
  0x20   : > { %p439_p0 = scmp.lt.s32.totalorder %s608_s12, 2  ;;  %s121_s30 = sand.u32 1, %s604_s11  }
  0x21   : > { %p715_p9 = por %p831_p2, %p33_p13  ;;  %p35_p3 = por %p34_p1, %p33_p13 }
  0x22   : > { %s396_s3 = sshll.u32 %s121_s30, 3  ;;  %s408_s4 = sshll.u32 %s608_s12, 7 }
  0x23   : > { %s832_s29 = scalar_select %p715_p9, 1, 0 }
  0x24   : > { %s728_s7 = scalar_lea.hbm %s819_s0, %s408_s4  ;;  %s125_s8 = scalar_lea.vmem [#allocation2], %s396_s3 }
  0x25   : > { %s133_s14 = sshll.u32 %s125_s8, 4  ;;  %p730_p11 = pnand %p439_p0, %p35_p3  ;;  %s134_s14 = int_to_ptr.vmem [resolvable:$true] %s133_s14 }
  0x26   : > { %s122_s19 = scalar_lea.sflag [#allocation3], %s121_s30  ;;  %s512_s21 = scalar_lea.hbm %s728_s7, 128 }
  0x27   : > { %p513_p12 = scmp.ne.s32.totalorder %s728_s7, %s512_s21  ;;  %p514_p13 = pneg %p730_p11 }
  0x28   : > { %s517_s24 = scalar_lea.hbm %s819_s0, 256  ;;  %p518_p10 = scmp.lt.s32.totalorder %s728_s7, %s819_s0 }
  0x29   : > { %p515_p5 = pnand %p514_p13, %p513_p12  ;;  %p519_p1 = scmp.lt.s32.totalorder %s517_s24, %s512_s21 }
  0x2b   : > { %p516_p7 = pneg %p515_p5  ;;  %p520_p2 = por %p519_p1, %p518_p10 }
  0x2d   : > { %p521_p0 = pnand %p520_p2, %p516_p7 }
  0x2f   : > { %524 = shalt.err (!%p521_p0)
}
  0x30   : > { %s525_s27 = scalar_lea.vmem %s134_s14, 128  ;;  %s611_s30 = smov [#allocation2]  }
  0x31   : > { %p526_p3 = scmp.ne.s32.totalorder %s134_s14, %s525_s27  ;;  %s530_s3 = sshll.u32 %s611_s30, 4  ;;  %s531_s3 = int_to_ptr.vmem [resolvable:$false] %s530_s3 }
  0x32   : > { %s532_s4 = scalar_lea.vmem %s531_s3, 256  ;;  %p533_p12 = scmp.lt.s32.totalorder %s134_s14, %s531_s3 }
  0x33   : > { %p528_p6 = pnand %p526_p3, %p514_p13  ;;  %p534_p5 = scmp.lt.s32.totalorder %s532_s4, %s525_s27 }
  0x35   : > { %p529_p9 = pneg %p528_p6  ;;  %p535_p4 = por %p534_p5, %p533_p12 }
  0x37   : > { %p536_p8 = pnand %p535_p4, %p529_p9 }
  0x39   : > { %539 = shalt.err (!%p536_p8)
}
  0x3a   : > { %433 = dma.hbm_to_vmem [thread:$0]  (!%p730_p11), %s728_s7, 128, %s134_s14, %s122_s19  }
  0x3b   : > { %p834_p7 = scmp.ne.s32.totalorder %s828_s17, 0 }
  0x3c   : > { %s751_s5 = sand.u32 (!%p834_p7), 1, %s600_s10   ;;  %p835_p4 = scmp.ne.s32.totalorder (!%p834_p7), %s826_s15, 0 }
  0x3d   : > { %142 = sbr.rel (%p834_p7) target bundleno = 965 (0x3c5), region = 28  ;;  %s400_s6 = sshll.u32 (!%p834_p7), %s751_s5, 3 }
  0x3e   : > { %s145_s8 = scalar_lea.sflag (!%p834_p7), [#allocation3], %s751_s5  ;;  %s148_s21 = scalar_lea.vmem (!%p834_p7), [#allocation2], %s400_s6 }
  0x42   : > { %583 = dma.done.wait (%p835_p4), %s145_s8, 128  }
  0x43   : > { %585 = vsyncadd (%p835_p4), %s145_s8, 4294967168  ;;  %p836_p6 = scmp.eq.s32.totalorder %s653_s13, 0 }
  0x45   : > { %587 = dma.done.wait (%p836_p6), [#allocation6], 64   ;;  %p837_p8 = pmov %p836_p6 }
  0x46   : > { %vm177_vm0 = vcmask 1043456   ;;  %v173_v0 = vld [vmem:[%s148_s21] sm:$0xff]  ;;  %v612_v5 = vmov 839922192   ;;  %v188_v7 = vlaneseq  ;;  %vm204_vm1 = vcmask 3072   ;;  %s614_s25 = smov 1  }
  0x47   : > { %589 = vsyncadd (%p837_p8), [#allocation6], 4294967232  ;;  %v175_v1 = vcombine.high %v173_v0, %v173_v0  ;;  %v178_v2 = vsel %vm177_vm0, %v173_v0, 0.0  ;;  %v186_v6 = vunpack.c.l.s4 %v612_v5  ;;  %v613_v52 = vmov 1   ;;  %v248_v53 = vld [vmem:[#allocation5] sm:$0xf] }
  0x48   : > { %v189_v9 = vshrl.u32 %v188_v7, 7  ;;  %479 = vset.pattern.permute.xlu1 %v613_v52  ;;  %480 = vset.pattern.permute.xlu0 %v613_v52  ;;  %v249_v54 = vsub.f32 1.0, %v248_v53  ;;  %s615_s26 = smov 127   ;;  %s409_s27 = sshll.u32 %s653_s13, 7 }
  0x49   : > { %v179_v3 = vsel %vm177_vm0, %v175_v1, 0.0  ;;  %v187_v8 = vunpack.c.0.s8 %v186_v6  ;;  %s172_s30 = scalar_lea.vmem [#allocation7], %s400_s6  ;;  %s310_s21 = scalar_lea.hbm %s821_s2, %s409_s27 }
  0x4a   : > { %v180_v4 = vadd.f32 %v179_v3, %v178_v2  ;;  %s312_s3 = sshll.u32 %s172_s30, 4  ;;  %p838_p11 = scmp.ne.s32.totalorder %s832_s29, 0  ;;  %s313_s3 = int_to_ptr.vmem [resolvable:$true] %s312_s3 }
  0x4b   : > { %v767_v10 = vsub.s32 %v187_v8, %v189_v9  ;;  %s616_s13 = smov [#allocation7]  }
  0x4c   : > { %181 = vadd.xlane.f32.xlu0 %v180_v4  ;;  %s544_s6 = sshll.u32 %s616_s13, 4  ;;  %s545_s6 = int_to_ptr.vmem [resolvable:$false] %s544_s6 }
  0x4d   : > { %p547_p1 = scmp.lt.s32.totalorder %s313_s3, %s545_s6 }
  0xd5   : > { %v182_v11 = vpop.xlane.xlu0 %181 }
  0xd6   : > { %v183_v12 = vmul.f32 0.00390625, %v182_v11 }
  0xd8   : > { %v191_v13 = vrot.slane %v183_v12, %v767_v10  ;;  %v205_v14 = vsel %vm204_vm1, %v183_v12, 0.0 }
  0xd9   : > { %206 = vadd.xlane.f32.xlu0 %v205_v14 }
  0xda   : > { %v771_v15 = vsub.f32 %v173_v0, %v191_v13 }
  0xdc   : > { %v194_v16 = vmul.f32 %v771_v15, %v771_v15 }
  0xde   : > { %v196_v17 = vcombine.high %v194_v16, %v194_v16  ;;  %v198_v18 = vsel %vm177_vm0, %v194_v16, 0.0 }
  0xe0   : > { %v199_v19 = vsel %vm177_vm0, %v196_v17, 0.0 }
  0xe1   : > { %v200_v20 = vadd.f32 %v199_v19, %v198_v18 }
  0xe3   : > { %201 = vadd.xlane.f32.xlu1 %v200_v20 }
 0x162   : > { %v207_v21 = vpop.xlane.xlu0 %206 }
 0x163   : > { %v208_v22 = vrot.slane %v207_v21, 4 }
 0x165   : > { %v209_v23 = vadd.f32 %v208_v22, %v207_v21 }
 0x167   : > { %v210_v24 = vrot.slane %v209_v23, 2 }
 0x169   : > { %v211_v25 = vadd.f32 %v210_v24, %v209_v23 }
 0x16b   : > { %v212_v26 = vrot.slane %v211_v25, 1 }
 0x16c   : > { %v202_v27 = vpop.xlane.xlu1 %201 }
 0x16d   : > { %v218_v28 = vsel %vm204_vm1, %v202_v27, 0.0  ;;  %v213_v29 = vadd.f32 %v212_v26, %v211_v25  ;;  %v203_v50 = vmul.f32 0.003921569, %v202_v27 }
 0x16e   : > { %219 = vadd.xlane.f32.xlu1 %v218_v28 }
 0x16f   : > { %410 = vpush %v213_v29  ;;  %v242_v51 = vadd.f32 1e-05, %v203_v50 }
 0x1a0   : > { %s411_s15 = spop %410 }
 0x1a1   : > { %s215_s17 = smul.f32 0.25, %s411_s15  ;;  %s298_s15 = scalar_lea.sflag [#allocation4], %s751_s5 }
 0x1a3   : > { %v216_v30 = vstv %s215_s17  ;;  %s540_s17 = scalar_lea.vmem %s313_s3, 128 }
 0x1a4   : > { %v217_v31 = vsub.f32 %v183_v12, %v216_v30  ;;  %p541_p9 = scmp.ne.s32.totalorder %s313_s3, %s540_s17 }
 0x1a6   : > { %v228_v32 = vmul.f32 %v217_v31, %v217_v31  ;;  %p542_p13 = pnand %p541_p9, %p838_p11 }
 0x1a8   : > { %v229_v33 = vsel %vm204_vm1, %v228_v32, 0.0  ;;  %p543_p10 = pneg %p542_p13 }
 0x1a9   : > { %230 = vadd.xlane.f32.xlu0 %v229_v33 }
 0x1f7   : > { %v220_v34 = vpop.xlane.xlu1 %219 }
 0x1f8   : > { %v221_v35 = vrot.slane %v220_v34, 4 }
 0x1fa   : > { %v222_v36 = vadd.f32 %v221_v35, %v220_v34 }
 0x1fc   : > { %v223_v37 = vrot.slane %v222_v36, 2 }
 0x1fe   : > { %v224_v38 = vadd.f32 %v223_v37, %v222_v36 }
 0x200   : > { %v225_v39 = vrot.slane %v224_v38, 1 }
 0x202   : > { %v226_v40 = vadd.f32 %v225_v39, %v224_v38 }
 0x204   : > { %412 = vpush %v226_v40 }
 0x232   : > { %v231_v41 = vpop.xlane.xlu0 %230 }
 0x233   : > { %v232_v42 = vrot.slane %v231_v41, 4 }
 0x235   : > { %v233_v43 = vadd.f32 %v232_v42, %v231_v41  ;;  %s413_s7 = spop %412 }
 0x237   : > { %v234_v44 = vrot.slane %v233_v43, 2 }
 0x239   : > { %v235_v45 = vadd.f32 %v234_v44, %v233_v43 }
 0x23b   : > { %v236_v46 = vrot.slane %v235_v45, 1 }
 0x23d   : > { %v237_v47 = vadd.f32 %v236_v46, %v235_v45 }
 0x23f   : > { %414 = vpush %v237_v47 }
 0x270   : > { %s415_s14 = spop %414 }
 0x271   : > { %s239_s18 = smul.f32 256.0, %s415_s14 }
 0x273   : > { %s240_s19 = sadd.f32 %s413_s7, %s239_s18  ;;  %s546_s7 = scalar_lea.vmem %s545_s6, 256 }
 0x274   : > { %p548_p2 = scmp.lt.s32.totalorder %s546_s7, %s540_s17 }
 0x275   : > { %s241_s22 = smul.f32 0.0009775171, %s240_s19 }
 0x276   : > { %p549_p0 = por %p548_p2, %p547_p1 }
 0x277   : > { %s244_s23 = sadd.f32 1e-05, %s241_s22 }
 0x278   : > { %p550_p3 = pnand %p549_p0, %p543_p10 }
 0x279   : > { %v245_v48 = vstv %s244_s23 }
 0x27a   : > { %482 = vrsqrt.f32 %v245_v48 }
 0x27b   : > { %484 = vrsqrt.f32 %v242_v51 }
 0x287   : > { %v483_v49 = vpop.eup %482 }
 0x288   : > { %416 = vpush %v483_v49  ;;  %v485_v55 = vpop.eup %484 }
 0x289   : > { %v252_v58 = vmul.f32 %v485_v55, %v248_v53 }
 0x2b9   : > { %s417_s24 = spop %416 }
 0x2ba   : > { %v250_v56 = vstv %s417_s24 }
 0x2bb   : > { %v251_v57 = vmul.f32 %v250_v56, %v249_v54 }
 0x2bd   : > { %v253_v59 = vadd.f32 %v252_v58, %v251_v57  ;;  %260 = vrot.lane.b32.xlu1 %v251_v57, %s614_s25 }
 0x2bf   : > { %255 = vrot.lane.b32.xlu0 %v253_v59, %s614_s25 }
 0x2c1   : > { %266 = vrot.lane.b32.xlu1 %v248_v53, %s615_s26 }
 0x32f   : > { %v261_v60 = vpop.permute.xlu1 %260 }
 0x330   : > { %v263_v61 = vmul.f32 %v261_v60, %v248_v53 }
 0x331   : > { %v256_v62 = vpop.permute.xlu0 %255 }
 0x332   : > { %v258_v63 = vmul.f32 %v256_v62, %v248_v53  ;;  %v264_v0 = vmul.f32 %v263_v61, %v217_v31 }
 0x333   : > { %v267_v1 = vpop.permute.xlu1 %266 }
 0x334   : > { %272 = vperm.xlu1 %479, %v258_v63   ;;  %v269_v2 = vadd.f32 %v267_v1, %v264_v0 }
 0x338   : > { %285 = vperm.xlu1 %479, %v269_v2  }
 0x3af   : > { %v273_v3 = vpop.permute.xlu1 %272 }
 0x3b0   : > { %v280_v4 = vrot.slane %v273_v3, %v767_v10 }
 0x3b2   : > { %v282_v6 = vmul.f32 %v280_v4, %v771_v15 }
 0x3b3   : > { %v286_v5 = vpop.permute.xlu1 %285 }
 0x3b4   : > { %v293_v7 = vrot.slane %v286_v5, %v767_v10 }
 0x3b6   : > { %v295_v8 = vadd.f32 %v293_v7, %v282_v6 }
 0x3b8   : > { %296 = vst [vmem:[%s172_s30] sm:$0xff] %v295_v8 }
 0x3b9   : > { %553 = shalt.err (!%p550_p3)
}
 0x3ba   : > { %s554_s14 = scalar_lea.hbm %s310_s21, 128  ;;  %s558_s19 = scalar_lea.hbm %s821_s2, 256 }
 0x3bb   : > { %p555_p12 = scmp.ne.s32.totalorder %s310_s21, %s554_s14  ;;  %p559_p4 = scmp.lt.s32.totalorder %s310_s21, %s821_s2 }
 0x3bc   : > { %p560_p6 = scmp.lt.s32.totalorder %s558_s19, %s554_s14 }
 0x3bd   : > { %p556_p5 = pnand %p555_p12, %p838_p11 }
 0x3be   : > { %p561_p8 = por %p560_p6, %p559_p4 }
 0x3bf   : > { %p557_p7 = pneg %p556_p5 }
 0x3c1   : > { %p562_p9 = pnand %p561_p8, %p557_p7 }
 0x3c3   : > { %565 = shalt.err (!%p562_p9)
}
 0x3c4   : > { %424 = dma.vmem_to_hbm [thread:$0]  (%p838_p11), %s313_s3, 128, %s310_s21, %s298_s15  }
 0x3c5 PF: > { %s324_s24 = sand.u32 1, %s596_s9   ;;  %p839_p13 = scmp.ne.s32.totalorder %s827_s16, 0 }
 0x3c6   : > { %p840_p10 = scmp.ge.s32.totalorder %s608_s12, 2  ;;  %s325_s25 = scalar_lea.sflag [#allocation4], %s324_s24 }
 0x3c8   : > { %p435_p1 = pnand %p840_p10, %p839_p13 }
 0x3ca   : > { %p436_p2 = pneg %p435_p1 }
 0x3cc   : > { %591 = dma.done.wait (%p436_p2), %s325_s25, 128  }
 0x3cd   : > { %593 = vsyncadd (%p436_p2), %s325_s25, 4294967168  ;;  %p16_p0 = scmp.ge.s32.totalorder %s680_s20, 4   ;;  %s841_s9 = smov %s600_s10 }
 0x3ce   : > { %s842_s10 = smov %s604_s11  ;;  %s843_s11 = smov %s707_s28 }
 0x3cf   : > { %s844_s12 = smov %s680_s20  ;;  %18 = sbr.rel (!%p16_p0) target bundleno = 6 (0x6), region = 77 }
 0x3d4   :  { %330 = vsyncpa [#allocation3], 1 }
 0x3d5   :  { %332 = vsyncpa [#allocation3 + $0x1], 1 }
 0x3d6   :  { %333 = vsyncpa [#allocation6], 1 }
 0x3d7   :  { %334 = vsyncpa [#allocation4], 1 }
 0x3d8   :  { %336 = vsyncpa [#allocation4 + $0x1], 1 }

</bundles_post_ra>
